<compile_context>
chip_gen: v6e
topology: v6e:2x2x1
jax: 0.10.0
libtpu: 0.0.40
codegen_flags: <defaults>
</compile_context>

<pallas_src>
import functools

import jax
import jax.numpy as jnp
from jax.experimental import pallas as pl
from jax.experimental.pallas import tpu as pltpu

_SUBLANE = 8
_MAX_TILE_ROWS = 16384          # beyond this the per-step DMA already amortizes overhead


def _round_up(v, m):
    return (v + m - 1) // m * m


def _vmem_capacity_bytes():
    # Generation-aware sizing (v5e/v6e: 128 MiB, v7x: 64 MiB per TensorCore).
    try:
        return int(pltpu.get_tpu_info().vmem_capacity_bytes)
    except Exception:
        return 64 * 1024 * 1024   # conservative fallback (v7x)


def _pick_tile_b(batch, in_dim, out_dim, x_itemsize, w_itemsize, out_itemsize):
    """Largest 8-aligned batch tile whose working set fits ~half of VMEM."""
    vmem_bytes = _vmem_capacity_bytes()
    const_b = in_dim * out_dim * w_itemsize + out_dim * 4        # resident W + bias row
    per_row = 2 * in_dim * x_itemsize + 2 * out_dim * out_itemsize  # dbl-buffered x / y tiles
    budget = max(vmem_bytes // 2 - const_b, _SUBLANE * per_row)
    max_rows = max(_SUBLANE, (budget // per_row) // _SUBLANE * _SUBLANE)
    return int(min(_round_up(batch, _SUBLANE), max_rows, _MAX_TILE_ROWS))


def _vmem_limit_bytes(tile_b, in_dim, out_dim, x_itemsize, w_itemsize, out_itemsize):
    """Scoped-VMEM limit matching what the chosen tiling actually uses."""
    vmem_bytes = _vmem_capacity_bytes()
    const_b = in_dim * out_dim * w_itemsize + out_dim * 4
    per_row = 2 * in_dim * x_itemsize + 2 * out_dim * out_itemsize
    limit = const_b + tile_b * per_row + (4 << 20)               # + compiler scratch headroom
    return int(min(max(limit, 16 << 20), vmem_bytes))


def _linear_kernel(x_ref, w_ref, b_ref, o_ref):
    # x_ref: (TB, IN)  w_ref: (IN, OUT)  b_ref: (1, OUT)  o_ref: (TB, OUT)
    # Mixed-precision friendly: if W is stored bf16 it is widened in-kernel
    # (cheap VPU cast after the DMA); accumulation is always f32 on the MXU.
    acc = jnp.dot(x_ref[...], w_ref[...], preferred_element_type=jnp.float32)
    o_ref[...] = (acc + b_ref[...]).astype(o_ref.dtype)


def prepare_msg_decoder_params(w_pt, b, param_dtype=None):
    """One-time parameter prep (hoisted out of the per-call path).

    w_pt: (OUT, IN) PyTorch nn.Linear weight layout
    b:    (OUT,)    bias
    param_dtype: optional storage dtype for the weight (e.g. jnp.bfloat16)
                 to halve the weight DMA; bias stays f32.
    Returns (w_t, b2d) with w_t: (IN, OUT) and b2d: (1, OUT).
    """
    dt = jnp.dtype(param_dtype) if param_dtype is not None else jnp.dtype(w_pt.dtype)
    w_t = jnp.asarray(w_pt).T.astype(dt)                 # (IN, OUT), transposed once
    b2d = jnp.asarray(b).astype(jnp.float32).reshape(1, -1)
    return w_t, b2d


@functools.partial(jax.jit, static_argnames=("tile_b",))
def msg_decoder_forward(x, w_t, b2d, *, tile_b=None):
    """y = x @ w_t + b   (== x @ W.T + b, PyTorch nn.Linear semantics).

    x:   (B, IN)   activation (fed in its own dtype — no wrapper cast/pad)
    w_t: (IN, OUT) pre-transposed weight (from prepare_msg_decoder_params)
    b2d: (1, OUT)  f32 bias row
    """
    B, IN = x.shape
    IN2, OUT = w_t.shape
    assert IN == IN2 and b2d.shape == (1, OUT)
    out_dtype = x.dtype

    x_isz = jnp.dtype(x.dtype).itemsize
    w_isz = jnp.dtype(w_t.dtype).itemsize
    o_isz = jnp.dtype(out_dtype).itemsize

    if tile_b is None:
        tile_b = _pick_tile_b(B, IN, OUT, x_isz, w_isz, o_isz)
    tile_b = max(_SUBLANE, min(_round_up(int(tile_b), _SUBLANE), _round_up(B, _SUBLANE)))
    vmem_limit = _vmem_limit_bytes(tile_b, IN, OUT, x_isz, w_isz, o_isz)

    grid = (pl.cdiv(B, tile_b),)   # ragged last block handled by Pallas masking

    # Un-padded, true flops / bytes so XLA doesn't over-serialize neighbours.
    cost = pl.CostEstimate(
        flops=2 * B * IN * OUT,
        transcendentals=0,
        bytes_accessed=(B * IN * x_isz
                        + IN * OUT * w_isz
                        + OUT * 4
                        + B * OUT * o_isz),
    )

    # Constant-index weight / bias blocks: fetched once, single-buffered.
    resident = pl.Buffered(buffer_count=1)

    y = pl.pallas_call(
        _linear_kernel,
        out_shape=jax.ShapeDtypeStruct((B, OUT), out_dtype),
        grid_spec=pltpu.PrefetchScalarGridSpec(
            num_scalar_prefetch=0,
            grid=grid,
            in_specs=[
                pl.BlockSpec((tile_b, IN), lambda i: (i, 0)),                    # x tile
                pl.BlockSpec((IN, OUT), lambda i: (0, 0), pipeline_mode=resident),  # weight
                pl.BlockSpec((1, OUT), lambda i: (0, 0), pipeline_mode=resident),   # bias row
            ],
            out_specs=pl.BlockSpec((tile_b, OUT), lambda i: (i, 0)),
        ),
        compiler_params=pltpu.CompilerParams(
            dimension_semantics=("parallel",),
            vmem_limit_bytes=vmem_limit,
        ),
        cost_estimate=cost,
    )(x, w_t, b2d)
    return y


if __name__ == "__main__":
    # Module hyper-params: nn.Linear(message_length, message_length).
    message_length = 32
    batch = 8

    key = jax.random.PRNGKey(0)
    kx, kw, kb, kx2 = jax.random.split(key, 4)

    # Deterministic parameters in PyTorch layout: W is (out, in), b is (out,).
    bound = 1.0 / (message_length ** 0.5)
    w_pt = jax.random.uniform(kw, (message_length, message_length),
                              jnp.float32, -bound, bound)
    b = jax.random.uniform(kb, (message_length,), jnp.float32, -bound, bound)

    # --- parameters prepared ONCE (weight transpose hoisted out of the call) --
    w_t, b2d = prepare_msg_decoder_params(w_pt, b)

    # --- small f32 run (matches the module's forward exactly) ----------------
    x = jax.random.normal(kx, (batch, message_length), jnp.float32)
    y = jax.block_until_ready(msg_decoder_forward(x, w_t, b2d))
    y_ref = x @ w_pt.T + b
    assert y.shape == (batch, message_length)
    assert jnp.allclose(y, y_ref, atol=1e-5, rtol=1e-5), "f32 mismatch vs reference"

    # --- larger, non-multiple-of-tile batch: multi-step pipelined grid with a
    #     ragged last block (no wrapper pad), bf16-stored weights prepared once,
    #     f32 activations fed directly (no wrapper cast), f32 accumulation -----
    big_batch = 300
    w_t16, b2d16 = prepare_msg_decoder_params(w_pt, b, param_dtype=jnp.bfloat16)
    x_big = jax.random.normal(kx2, (big_batch, message_length), jnp.float32)
    y_big = jax.block_until_ready(
        msg_decoder_forward(x_big, w_t16, b2d16, tile_b=128))
    y_big_ref = x_big @ w_pt.T + b
    assert y_big.shape == (big_batch, message_length)
    assert jnp.allclose(y_big, y_big_ref, atol=5e-2, rtol=5e-2), "bf16-weight mismatch"

    # TODO(synk): save_model/load_model (torch checkpoint I/O) is host-side and
    # has no kernel equivalent; parameters are passed in explicitly instead.
    print("KERNEL_OK")
</pallas_src>

<mosaic_0001>
module attributes {stable_mosaic.version = 11 : i64} {
  func.func @_linear_kernel(%arg0: i32, %arg1: memref<8x32xf32, #tpu.memory_space<vmem>>, %arg2: memref<32x32xf32, #tpu.memory_space<vmem>>, %arg3: memref<1x32xf32, #tpu.memory_space<vmem>>, %arg4: memref<8x32xf32, #tpu.memory_space<vmem>>) attributes {dimension_semantics = [#tpu.dimension_semantics<parallel>], iteration_bounds = array<i64: 1>, scalar_prefetch = 0 : i64, scratch_operands = 0 : i64, tpu.core_type = #tpu.core_type<tc>, window_params = [{transform_indices = @transform_0, window_bounds = array<i64: 8, 32>}, {pipeline_mode = #tpu.pipeline_mode<synchronous>, transform_indices = @transform_1, window_bounds = array<i64: 32, 32>}, {pipeline_mode = #tpu.pipeline_mode<synchronous>, transform_indices = @transform_2, window_bounds = array<i64: 1, 32>}, {transform_indices = @transform_3, window_bounds = array<i64: 8, 32>}]} {
    %c0 = arith.constant 0 : index
    %c0_0 = arith.constant 0 : index
    %0 = vector.load %arg1[%c0, %c0_0] : memref<8x32xf32, #tpu.memory_space<vmem>>, vector<8x32xf32>
    %c0_1 = arith.constant 0 : index
    %c0_2 = arith.constant 0 : index
    %1 = vector.load %arg2[%c0_1, %c0_2] : memref<32x32xf32, #tpu.memory_space<vmem>>, vector<32x32xf32>
    %cst = arith.constant dense<0.000000e+00> : vector<8x32xf32>
    %2 = tpu.matmul %0, %1, %cst {dimension_numbers = #tpu.dot_dimension_numbers<[1], [0], [0], [1], [0, 0, 1, 1], [], []>} : vector<8x32xf32>, vector<32x32xf32>, vector<8x32xf32> -> vector<8x32xf32>
    %c0_3 = arith.constant 0 : index
    %c0_4 = arith.constant 0 : index
    %3 = vector.load %arg3[%c0_3, %c0_4] : memref<1x32xf32, #tpu.memory_space<vmem>>, vector<1x32xf32>
    %4 = vector.broadcast %3 : vector<1x32xf32> to vector<8x32xf32>
    %5 = arith.addf %2, %4 : vector<8x32xf32>
    %c0_5 = arith.constant 0 : index
    %c0_6 = arith.constant 0 : index
    %6 = vector.load %arg4[%c0_5, %c0_6] : memref<8x32xf32, #tpu.memory_space<vmem>>, vector<8x32xf32>
    tpu.vector_store %arg4[%c0_5, %c0_6], %5 {strides = array<i32>} : memref<8x32xf32, #tpu.memory_space<vmem>>, vector<8x32xf32>,
    return
  }
  func.func @transform_0(%arg0: i32) -> (i32, i32) {
    %c0_i32 = arith.constant 0 : i32
    %c0_i32_0 = arith.constant 0 : i32
    return %arg0, %c0_i32 : i32, i32
  }
  func.func @transform_1(%arg0: i32) -> (i32, i32) {
    %c0_i32 = arith.constant 0 : i32
    %c0_i32_0 = arith.constant 0 : i32
    %c0_i32_1 = arith.constant 0 : i32
    return %c0_i32, %c0_i32_0 : i32, i32
  }
  func.func @transform_2(%arg0: i32) -> (i32, i32) {
    %c0_i32 = arith.constant 0 : i32
    %c0_i32_0 = arith.constant 0 : i32
    %c0_i32_1 = arith.constant 0 : i32
    return %c0_i32, %c0_i32_0 : i32, i32
  }
  func.func @transform_3(%arg0: i32) -> (i32, i32) {
    %c0_i32 = arith.constant 0 : i32
    %c0_i32_0 = arith.constant 0 : i32
    return %arg0, %c0_i32 : i32, i32
  }
}

</mosaic_0001>

<bundles_post_ra>
// kernel: msg_decoder_forward.1
= control target key start
LH: loop header
LB: loop body
LE: loop exit
PB: predicated region body
PF: predicated region fallthrough
CT: control target
= control target key end

     0   :  { %8 = vsyncpa [#allocation3], 0  ;;  %s274_s0 = inlined_call_operand.hbm [shape: f32[8,32], index: 0, kind: input, shape index: {}]   ;;  %s275_s1 = inlined_call_operand.hbm [shape: f32[32,32], index: 1, kind: input, shape index: {}]   ;;  %s276_s2 = inlined_call_operand.vmem [shape: f32[1,32], index: 2, kind: input, shape index: {}]   ;;  %s277_s3 = inlined_call_operand.hbm [shape: f32[8,32], index: 3, kind: output, shape index: {}]  }
   0x1   :  { %9 = vsyncpa [#allocation6], 0 }
   0x2   :  { %10 = vsyncpa [#allocation4], 0  ;;  %s235_s12 = smov [#allocation2]   ;;  %s236_s14 = smov [#allocation5]  }
   0x3   :  { %s17_s13 = sshll.u32 %s235_s12, 4  ;;  %s26_s15 = sshll.u32 %s236_s14, 4  ;;  %s18_s13 = int_to_ptr.vmem [resolvable:$true] %s17_s13  ;;  %s27_s15 = int_to_ptr.vmem [resolvable:$true] %s26_s15 }
   0x4   :  { %s177_s16 = scalar_lea.vmem %s18_s13, 128  ;;  %p182_p1 = scmp.lt.s32.totalorder %s18_s13, %s18_s13 }
   0x5   :  { %p178_p0 = scmp.ne.s32.totalorder %s18_s13, %s177_s16  ;;  %p183_p2 = scmp.lt.s32.totalorder %s177_s16, %s177_s16 }
   0x7   :  { %p184_p3 = por %p183_p2, %p182_p1 }
   0x9   :  { %p185_p4 = pnand %p184_p3, %p178_p0 }
   0xb   :  { %188 = shalt.err (!%p185_p4)
}
   0xc   :  { %20 = dma.hbm_to_vmem [thread:$0]  %s274_s0, 128, %s18_s13, [#allocation3]  }
   0xd   :  { %s197_s19 = scalar_lea.vmem %s27_s15, 512  ;;  %p202_p6 = scmp.lt.s32.totalorder %s27_s15, %s27_s15 }
   0xe   :  { %p198_p5 = scmp.ne.s32.totalorder %s27_s15, %s197_s19  ;;  %p203_p7 = scmp.lt.s32.totalorder %s197_s19, %s197_s19 }
  0x10   :  { %p204_p8 = por %p203_p7, %p202_p6 }
  0x12   :  { %p205_p9 = pnand %p204_p8, %p198_p5 }
  0x14   :  { %208 = shalt.err (!%p205_p9)
}
  0x15   :  { %s237_s20 = smov 128   ;;  %s238_s21 = smov 8  }
  0x16   :  { %32 = dma.hbm_to_vmem [thread:$0]  %s275_s1, 512, %s27_s15, [#allocation6], %s237_s20, %s237_s20, %s238_s21  }
  0x17   :  { %229 = dma.done.wait [#allocation3], 128  }
  0x18   :  { %230 = vsyncadd [#allocation3], 4294967168 }
  0x19   :  { %231 = dma.done.wait [#allocation6], 512  }
  0x1a   :  { %232 = vsyncadd [#allocation6], 4294966784  ;;  %v239_v0 = vmov 0.0   ;;  %vm240_vm0 = vmmov 0   ;;  %v45_v1 = vld [vmem:[#allocation5 + $0x18] sm:$0xff]  ;;  %v44_v2 = vld [vmem:[#allocation5 + $0x10] sm:$0xff] }
  0x1b   :  { %151 = vmatprep.subr.mxu0 %v239_v0  ;;  %159 = vmatprep.mubr.msk.f32.mxu0 %vm240_vm0, %v239_v0  ;;  %v43_v3 = vld [vmem:[#allocation5 + $0x8] sm:$0xff]  ;;  %v42_v4 = vld [vmem:[#allocation5] sm:$0xff]  ;;  %v41_v5 = vld [vmem:[#allocation2] sm:$0xff]  ;;  %vm53_vm1 = vcmask 261120   ;;  %s241_s24 = smov [#allocation7]  }
  0x1c   :  { %152 = vmatpush3.msra.mxu0 %v45_v1  ;;  %v144_v6 = vld [vmem:[%s276_s2] ss:$0 sm:$0xff]  ;;  %s134_s25 = sshll.u32 %s241_s24, 4  ;;  %s135_s25 = int_to_ptr.vmem [resolvable:$true] %s134_s25 }
  0x1d   :  { %153 = vmatprep.subr.mxu0 %v239_v0  ;;  %s209_s26 = scalar_lea.vmem %s135_s25, 128  ;;  %p214_p11 = scmp.lt.s32.totalorder %s135_s25, %s135_s25 }
  0x1e   :  { %154 = vmatpush3.msra.mxu0 %v44_v2  ;;  %p210_p10 = scmp.ne.s32.totalorder %s135_s25, %s209_s26  ;;  %p215_p12 = scmp.lt.s32.totalorder %s209_s26, %s209_s26 }
  0x1f   :  { %155 = vmatprep.subr.mxu0 %v239_v0 }
  0x20   :  { %156 = vmatpush3.msra.mxu0 %v43_v3  ;;  %p216_p13 = por %p215_p12, %p214_p11 }
  0x21   :  { %157 = vmatprep.subr.mxu0 %v239_v0 }
  0x22   :  { %158 = vmatpush3.msra.mxu0 %v42_v4  ;;  %p217_p0 = pnand %p216_p13, %p210_p10 }
  0x23   :  { %160 = vmatmul.mubr.msk.f32.vlgmr.msra.gmra.mxu0 %vm53_vm1, %v41_v5 }
  0xe3   :  { %v123_v7 = vpop.f32.mrf.mxu0 }
  0xe4   :  { %v124_v8 = vadd.f32 %v144_v6, %v123_v7 }
  0xe5   :  { %v161_v9 = vpop.f32.mrf.mxu0 }
  0xe6   :  { %127 = vst.msk [vmem:[#allocation7] sm:$0xff] %vm53_vm1, %v124_v8 }
  0xe7   :  { %220 = shalt.err (!%p217_p0)
}
  0xe8   :  { %137 = dma.vmem_to_hbm [thread:$0]  %s135_s25, 128, %s277_s3, [#allocation4]  }
  0xe9   :  { %233 = dma.done.wait [#allocation4], 128  }
  0xea   :  { %234 = vsyncadd [#allocation4], 4294967168 }
  0xeb   :  { %141 = vsyncpa [#allocation3], 1 }
  0xec   :  { %142 = vsyncpa [#allocation6], 1 }
  0xed   :  { %143 = vsyncpa [#allocation4], 1 }

</bundles_post_ra>
